<compile_context>
chip_gen: v7x
topology: tpu7x:2x2x1
jax: 0.10.0
libtpu: 0.0.40
codegen_flags: <defaults>
</compile_context>

<pallas_src>
import functools

import jax
import jax.numpy as jnp
from jax import lax
from jax.experimental import pallas as pl
from jax.experimental.pallas import tpu as pltpu


_VMEM_INPUT_BUDGET = 24 * 1024 * 1024   # double-buffered logits(+teacher) tiles
_VMEM_LIMIT_BYTES = 48 * 1024 * 1024    # comfortably under v7x's 64 MiB/TC physical VMEM


def _sublane_multiple(dtype):
    return {4: 8, 2: 16, 1: 32}.get(jnp.dtype(dtype).itemsize, 8)


def _choose_tiles(n, c, big_dtypes):
    """Row/class tile sizes for the fused loss kernel (no wrapper-side padding)."""
    sub = max(_sublane_multiple(dt) for dt in big_dtypes)
    bytes_per_elem = sum(jnp.dtype(dt).itemsize for dt in big_dtypes)
    # Class tile: keep the full, lane-dense class axis unless that would force the row tile
    # under ~256 rows; then tile C in multiples of 128 and reduce online (flash-style).
    if c <= 2048 or _VMEM_INPUT_BUDGET // (2 * c * bytes_per_elem) >= 256:
        tc = c
    else:
        tc = _VMEM_INPUT_BUDGET // (2 * 512 * bytes_per_elem)
        tc = max(128, (tc // 128) * 128)
        if tc >= c:
            tc = c
    # Row tile: as large as the double-buffer budget allows, capped at 1024 rows
    # (HBM-roofline plateau) and at the (sublane-rounded) row count.
    bt = _VMEM_INPUT_BUDGET // (2 * tc * bytes_per_elem)
    bt = min(bt, 1024, n)
    if n > sub:
        bt = max((bt // sub) * sub, sub)
    else:
        bt = n
    return bt, tc


def _loss_partials_kernel(*refs, n_rows, n_cols, with_kl, cols_ragged):
    """Fused CE + custom-KL partial sums with online (flash-style) row reductions.

    Grid: (row blocks ["parallel"], class blocks ["arbitrary"]).
    Inputs per step : logits [bt,tc], targets [bt,1] i32, (teacher [bt,tc]).
    Output per row block: [1,8,128] f32 tile; [0,0,0]=sum_i ce_i, [0,0,1]=sum_i kl_i.
    Scratch (per-row online state, f32 [bt,1]): m_p, z_p, picked (+ a, m_q, z_q for KL).
    """
    if with_kl:
        (logits_ref, tgt_ref, teacher_ref, out_ref,
         m_p_ref, z_p_ref, picked_ref, a_ref, m_q_ref, z_q_ref) = refs
    else:
        (logits_ref, tgt_ref, out_ref, m_p_ref, z_p_ref, picked_ref) = refs
        teacher_ref = a_ref = m_q_ref = z_q_ref = None

    i = pl.program_id(0)
    j = pl.program_id(1)
    neg_inf = jnp.float32(-jnp.inf)

    # ---- init per-row online accumulators at the first class block ----
    @pl.when(j == 0)
    def _():
        m_p_ref[...] = jnp.full(m_p_ref.shape, -jnp.inf, jnp.float32)
        z_p_ref[...] = jnp.zeros(z_p_ref.shape, jnp.float32)
        picked_ref[...] = jnp.zeros(picked_ref.shape, jnp.float32)
        if with_kl:
            a_ref[...] = jnp.zeros(a_ref.shape, jnp.float32)
            m_q_ref[...] = jnp.full(m_q_ref.shape, -jnp.inf, jnp.float32)
            z_q_ref[...] = jnp.zeros(z_q_ref.shape, jnp.float32)

    x = logits_ref[...].astype(jnp.float32)            # upcast in-kernel (inputs stream native dtype)
    bt, tc = x.shape
    col = j * tc + lax.broadcasted_iota(jnp.int32, (bt, tc), 1)

    if cols_ragged:
        col_ok = col < n_cols                          # mask garbage cols of the ragged last C block
        x_m = jnp.where(col_ok, x, neg_inf)
    else:
        col_ok = None
        x_m = x

    # ---- online logsumexp over logits (shared by CE and KL: single exp pass) ----
    m_old = m_p_ref[...]
    m_new = jnp.maximum(m_old, jnp.max(x_m, axis=-1, keepdims=True))
    scale = jnp.exp(m_old - m_new)
    e = jnp.exp(x_m - m_new)                           # masked cols -> exp(-inf) = 0
    z_p_ref[...] = z_p_ref[...] * scale + jnp.sum(e, axis=-1, keepdims=True)
    m_p_ref[...] = m_new

    # ---- gather logits[target] via block-local one-hot ----
    onehot = col == tgt_ref[...]
    if cols_ragged:
        onehot = jnp.logical_and(onehot, col_ok)
    picked_ref[...] += jnp.sum(jnp.where(onehot, x, 0.0), axis=-1, keepdims=True)

    if with_kl:
        t = teacher_ref[...].astype(jnp.float32)
        diff = x - t
        if cols_ragged:
            diff = jnp.where(col_ok, diff, 0.0)
            t_m = jnp.where(col_ok, t, neg_inf)
        else:
            t_m = t
        # A = sum_c exp(logits - m_p) * (logits - teacher), rescaled online with m_p.
        a_ref[...] = a_ref[...] * scale + jnp.sum(e * diff, axis=-1, keepdims=True)
        # Online logsumexp over teacher.
        mq_old = m_q_ref[...]
        mq_new = jnp.maximum(mq_old, jnp.max(t_m, axis=-1, keepdims=True))
        z_q_ref[...] = (z_q_ref[...] * jnp.exp(mq_old - mq_new)
                        + jnp.sum(jnp.exp(t_m - mq_new), axis=-1, keepdims=True))
        m_q_ref[...] = mq_new

    # ---- finalize: per-row-block partial sums over valid rows (ragged last block masked) ----
    @pl.when(j == pl.num_programs(1) - 1)
    def _():
        row = i * bt + lax.broadcasted_iota(jnp.int32, (bt, 1), 0)
        valid = row < n_rows
        lse_p = m_p_ref[...] + jnp.log(z_p_ref[...])
        ce_rows = lse_p - picked_ref[...]
        ce_sum = jnp.sum(jnp.where(valid, ce_rows, 0.0))
        if with_kl:
            lse_q = m_q_ref[...] + jnp.log(z_q_ref[...])
            # sum_c p*(logp - logq) = A/Z_p - lse_p + lse_q  (the +eps shift cancels exactly)
            kl_rows = a_ref[...] / z_p_ref[...] - lse_p + lse_q
            kl_sum = jnp.sum(jnp.where(valid, kl_rows, 0.0))
        else:
            kl_sum = jnp.float32(0.0)
        lane = lax.broadcasted_iota(jnp.int32, (1, 8, 128), 2)
        subl = lax.broadcasted_iota(jnp.int32, (1, 8, 128), 1)
        tile = jnp.where((subl == 0) & (lane == 0), ce_sum, 0.0)
        tile = jnp.where((subl == 0) & (lane == 1), kl_sum, tile)
        out_ref[...] = tile.astype(jnp.float32)


def _ce_kl_partial_sums(logits, targets, teacher_logits=None, *,
                        block_rows=None, block_cols=None):
    """Returns (ce_sum, kl_sum) over the batch from a single fused Pallas kernel.

    ce_sum = sum_i [ logsumexp(logits_i) - logits_i[targets_i] ]
    kl_sum = sum_{i,c} p*log(p/q) with p/q = softmax(logits+eps) / softmax(teacher+eps)
             (0 if teacher_logits is None).
    """
    n, c = logits.shape
    with_kl = teacher_logits is not None
    big_dtypes = [logits.dtype] + ([teacher_logits.dtype] if with_kl else [])
    if block_rows is None or block_cols is None:
        bt, tc = _choose_tiles(n, c, big_dtypes)
    else:
        bt, tc = block_rows, block_cols

    grid = (pl.cdiv(n, bt), pl.cdiv(c, tc))
    targets_2d = targets.astype(jnp.int32).reshape(n, 1)

    inputs = [logits, targets_2d]
    in_specs = [pl.BlockSpec((bt, tc), lambda i, j: (i, j)),
                # Block index constant in j -> targets are only re-fetched per row block.
                pl.BlockSpec((bt, 1), lambda i, j: (i, 0))]
    if with_kl:
        inputs.append(teacher_logits)
        in_specs.append(pl.BlockSpec((bt, tc), lambda i, j: (i, j)))

    scratch = [pltpu.VMEM((bt, 1), jnp.float32)] * (6 if with_kl else 3)

    kernel = functools.partial(
        _loss_partials_kernel, n_rows=n, n_cols=c,
        with_kl=with_kl, cols_ragged=(c % tc != 0))

    partials = pl.pallas_call(
        kernel,
        out_shape=jax.ShapeDtypeStruct((grid[0], 8, 128), jnp.float32),
        grid=grid,
        in_specs=in_specs,
        # Aligned (1,8,128) per-row-block output tile; reduced in JAX so the row axis can
        # stay "parallel" (sharded across both TensorCores on v7x).
        out_specs=pl.BlockSpec((1, 8, 128), lambda i, j: (i, 0, 0)),
        scratch_shapes=scratch,
        compiler_params=pltpu.CompilerParams(
            dimension_semantics=("parallel", "arbitrary"),
            vmem_limit_bytes=_VMEM_LIMIT_BYTES),
    )(*inputs)

    ce_sum = jnp.sum(partials[:, 0, 0])
    kl_sum = jnp.sum(partials[:, 0, 1])
    return ce_sum, kl_sum


class CustomLoss:
    """JAX/Pallas port of the PyTorch CustomLoss module (forward pass only)."""

    def __init__(self, args):
        self.args = args
        self.quantization_config = args.dataset_config['quantization']
        self.model = args.classifier
        self.loss_functions_to_use = self.quantization_config['loss_function_for_activation']
        # TODO(synk): nn.CrossEntropyLoss is stateless with default args; it is realized
        # directly inside the fused Pallas kernel instead of as a submodule.

    def kl_divergence(self, p, q):
        # Standalone (pure-JAX) equivalent of the reference method; forward() uses the
        # fused Pallas kernel instead.
        epsilon = 1e-08
        p = jax.nn.softmax(p + epsilon, axis=-1)
        q = jax.nn.softmax(q + epsilon, axis=-1)
        return jnp.sum(p * jnp.log(p / q))

    def forward(self, logits, targets, teacher_logits=None):
        training = bool(getattr(self.model, "training", False))
        n = logits.shape[0]

        if training:
            for loss_func_str in self.loss_functions_to_use:
                if loss_func_str not in ('ce_output_activation',
                                         'kl_divergence_st_output_activation'):
                    raise NotImplementedError(
                        f'Loss function {loss_func_str} is not implemented.')
            need_kl = 'kl_divergence_st_output_activation' in self.loss_functions_to_use
            ce_sum, kl_sum = _ce_kl_partial_sums(
                logits, targets, teacher_logits if need_kl else None)
            total_loss = jnp.float32(0.0)
            for loss_func_str in self.loss_functions_to_use:
                if loss_func_str == 'ce_output_activation':
                    total_loss = total_loss + ce_sum / n
                else:  # 'kl_divergence_st_output_activation'
                    total_loss = total_loss + kl_sum
            return total_loss
        else:
            assert teacher_logits is None, \
                'Teacher logits should not be provided during inference.'
            ce_sum, _ = _ce_kl_partial_sums(logits, targets, None)
            return ce_sum / n

    __call__ = forward


# ----------------------------- demo / self-check -----------------------------

class _MockClassifier:
    def __init__(self, training):
        self.training = training


class _MockArgs:
    def __init__(self, training):
        self.dataset_config = {
            'quantization': {
                'loss_function_for_activation': [
                    'ce_output_activation',
                    'kl_divergence_st_output_activation',
                ],
            },
        }
        self.classifier = _MockClassifier(training)


def _ref_ce(logits, targets):
    lse = jax.nn.logsumexp(logits, axis=-1)
    picked = jnp.take_along_axis(logits, targets[:, None], axis=-1)[:, 0]
    return jnp.mean(lse - picked)


def _ref_kl(p, q):
    eps = 1e-08
    p = jax.nn.softmax(p + eps, axis=-1)
    q = jax.nn.softmax(q + eps, axis=-1)
    return jnp.sum(p * jnp.log(p / q))


if __name__ == "__main__":
    keys = jax.random.split(jax.random.PRNGKey(0), 9)

    # ---- 1) module-level demo at small shapes (training & eval) ----
    batch, num_classes = 16, 32
    logits = jax.random.normal(keys[0], (batch, num_classes), dtype=jnp.float32)
    teacher_logits = jax.random.normal(keys[1], (batch, num_classes), dtype=jnp.float32)
    targets = jax.random.randint(keys[2], (batch,), 0, num_classes, dtype=jnp.int32)

    train_loss_mod = CustomLoss(_MockArgs(training=True))
    train_loss = jax.jit(lambda lg, tg, th: train_loss_mod(lg, tg, th))(
        logits, targets, teacher_logits)
    eval_loss_mod = CustomLoss(_MockArgs(training=False))
    eval_loss = jax.jit(lambda lg, tg: eval_loss_mod(lg, tg))(logits, targets)
    jax.block_until_ready((train_loss, eval_loss))

    ref_train = _ref_ce(logits, targets) + _ref_kl(logits, teacher_logits)
    ref_eval = _ref_ce(logits, targets)
    assert train_loss.shape == () and bool(jnp.isfinite(train_loss))
    assert eval_loss.shape == () and bool(jnp.isfinite(eval_loss))
    assert jnp.allclose(train_loss, ref_train, rtol=5e-4, atol=5e-4), (train_loss, ref_train)
    assert jnp.allclose(eval_loss, ref_eval, rtol=5e-4, atol=5e-4), (eval_loss, ref_eval)

    # ---- 2) ragged rows + tiled class axis (forced small tiles, f32, no padding) ----
    n2, c2 = 37, 640
    lg2 = jax.random.normal(keys[3], (n2, c2), dtype=jnp.float32)
    th2 = jax.random.normal(keys[4], (n2, c2), dtype=jnp.float32)
    tg2 = jax.random.randint(keys[5], (n2,), 0, c2, dtype=jnp.int32)
    ce2, kl2 = _ce_kl_partial_sums(lg2, tg2, th2, block_rows=16, block_cols=256)
    jax.block_until_ready((ce2, kl2))
    assert jnp.allclose(ce2 / n2, _ref_ce(lg2, tg2), rtol=5e-4, atol=5e-4), (ce2 / n2,)
    assert jnp.allclose(kl2, _ref_kl(lg2, th2), rtol=5e-4, atol=5e-4), (kl2,)

    # ---- 3) bf16 inputs streamed natively, ragged rows, default tiling ----
    n3, c3 = 24, 384
    lg3 = jax.random.normal(keys[6], (n3, c3), dtype=jnp.float32).astype(jnp.bfloat16)
    th3 = jax.random.normal(keys[7], (n3, c3), dtype=jnp.float32).astype(jnp.bfloat16)
    tg3 = jax.random.randint(keys[8], (n3,), 0, c3, dtype=jnp.int32)
    ce3, kl3 = _ce_kl_partial_sums(lg3, tg3, th3)
    jax.block_until_ready((ce3, kl3))
    lg3f, th3f = lg3.astype(jnp.float32), th3.astype(jnp.float32)
    assert jnp.allclose(ce3 / n3, _ref_ce(lg3f, tg3), rtol=1e-3, atol=1e-3), (ce3 / n3,)
    assert jnp.allclose(kl3, _ref_kl(lg3f, th3f), rtol=1e-3, atol=1e-3), (kl3,)

    print("KERNEL_OK")
</pallas_src>

<mosaic_0001>
module attributes {stable_mosaic.version = 11 : i64} {
  func.func @_loss_partials_kernel(%arg0: i32, %arg1: i32, %arg2: memref<16x32xf32, #tpu.memory_space<vmem>>, %arg3: memref<16x1xi32, #tpu.memory_space<vmem>>, %arg4: memref<16x32xf32, #tpu.memory_space<vmem>>, %arg5: memref<1x8x128xf32, #tpu.memory_space<vmem>>, %arg6: memref<16x1xf32, #tpu.memory_space<vmem>>, %arg7: memref<16x1xf32, #tpu.memory_space<vmem>>, %arg8: memref<16x1xf32, #tpu.memory_space<vmem>>, %arg9: memref<16x1xf32, #tpu.memory_space<vmem>>, %arg10: memref<16x1xf32, #tpu.memory_space<vmem>>, %arg11: memref<16x1xf32, #tpu.memory_space<vmem>>) attributes {dimension_semantics = [#tpu.dimension_semantics<parallel>, #tpu.dimension_semantics<arbitrary>], iteration_bounds = array<i64: 1, 1>, scalar_prefetch = 0 : i64, scratch_operands = 6 : i64, tpu.core_type = #tpu.core_type<tc>, window_params = [{transform_indices = @transform_0, window_bounds = array<i64: 16, 32>}, {transform_indices = @transform_1, window_bounds = array<i64: 16, 1>}, {transform_indices = @transform_2, window_bounds = array<i64: 16, 32>}, {transform_indices = @transform_3, window_bounds = array<i64: 1, 8, 128>}]} {
    %c0_i32 = arith.constant 0 : i32
    %0 = arith.cmpi eq, %arg1, %c0_i32 : i32
    %1 = arith.extui %0 : i1 to i32
    %c0_i32_0 = arith.constant 0 : i32
    %2 = arith.cmpi ne, %1, %c0_i32_0 : i32
    scf.if %2 {
      %cst_38 = arith.constant 0xFF800000 : f32
      %62 = vector.broadcast %cst_38 : f32 to vector<16x1xf32>
      %c0_39 = arith.constant 0 : index
      %c0_40 = arith.constant 0 : index
      %63 = vector.load %arg6[%c0_39, %c0_40] : memref<16x1xf32, #tpu.memory_space<vmem>>, vector<16x1xf32>
      tpu.vector_store %arg6[%c0_39, %c0_40], %62 {strides = array<i32>} : memref<16x1xf32, #tpu.memory_space<vmem>>, vector<16x1xf32>,
      %cst_41 = arith.constant 0.000000e+00 : f32
      %64 = vector.broadcast %cst_41 : f32 to vector<16x1xf32>
      %c0_42 = arith.constant 0 : index
      %c0_43 = arith.constant 0 : index
      %65 = vector.load %arg7[%c0_42, %c0_43] : memref<16x1xf32, #tpu.memory_space<vmem>>, vector<16x1xf32>
      tpu.vector_store %arg7[%c0_42, %c0_43], %64 {strides = array<i32>} : memref<16x1xf32, #tpu.memory_space<vmem>>, vector<16x1xf32>,
      %cst_44 = arith.constant 0.000000e+00 : f32
      %66 = vector.broadcast %cst_44 : f32 to vector<16x1xf32>
      %c0_45 = arith.constant 0 : index
      %c0_46 = arith.constant 0 : index
      %67 = vector.load %arg8[%c0_45, %c0_46] : memref<16x1xf32, #tpu.memory_space<vmem>>, vector<16x1xf32>
      tpu.vector_store %arg8[%c0_45, %c0_46], %66 {strides = array<i32>} : memref<16x1xf32, #tpu.memory_space<vmem>>, vector<16x1xf32>,
      %cst_47 = arith.constant 0.000000e+00 : f32
      %68 = vector.broadcast %cst_47 : f32 to vector<16x1xf32>
      %c0_48 = arith.constant 0 : index
      %c0_49 = arith.constant 0 : index
      %69 = vector.load %arg9[%c0_48, %c0_49] : memref<16x1xf32, #tpu.memory_space<vmem>>, vector<16x1xf32>
      tpu.vector_store %arg9[%c0_48, %c0_49], %68 {strides = array<i32>} : memref<16x1xf32, #tpu.memory_space<vmem>>, vector<16x1xf32>,
      %cst_50 = arith.constant 0xFF800000 : f32
      %70 = vector.broadcast %cst_50 : f32 to vector<16x1xf32>
      %c0_51 = arith.constant 0 : index
      %c0_52 = arith.constant 0 : index
      %71 = vector.load %arg10[%c0_51, %c0_52] : memref<16x1xf32, #tpu.memory_space<vmem>>, vector<16x1xf32>
      tpu.vector_store %arg10[%c0_51, %c0_52], %70 {strides = array<i32>} : memref<16x1xf32, #tpu.memory_space<vmem>>, vector<16x1xf32>,
      %cst_53 = arith.constant 0.000000e+00 : f32
      %72 = vector.broadcast %cst_53 : f32 to vector<16x1xf32>
      %c0_54 = arith.constant 0 : index
      %c0_55 = arith.constant 0 : index
      %73 = vector.load %arg11[%c0_54, %c0_55] : memref<16x1xf32, #tpu.memory_space<vmem>>, vector<16x1xf32>
      tpu.vector_store %arg11[%c0_54, %c0_55], %72 {strides = array<i32>} : memref<16x1xf32, #tpu.memory_space<vmem>>, vector<16x1xf32>,
    } else {
    }
    %c0 = arith.constant 0 : index
    %c0_1 = arith.constant 0 : index
    %3 = vector.load %arg2[%c0, %c0_1] : memref<16x32xf32, #tpu.memory_space<vmem>>, vector<16x32xf32>
    %c32_i32 = arith.constant 32 : i32
    %4 = arith.muli %arg1, %c32_i32 : i32
    %5 = tpu.iota {dimensions = array<i32: 1>} : vector<16x32xi32>
    %6 = vector.broadcast %4 : i32 to vector<16x32xi32>
    %7 = arith.addi %6, %5 : vector<16x32xi32>
    %c0_2 = arith.constant 0 : index
    %c0_3 = arith.constant 0 : index
    %8 = vector.load %arg6[%c0_2, %c0_3] : memref<16x1xf32, #tpu.memory_space<vmem>>, vector<16x1xf32>
    %cst = arith.constant dense<0xFF800000> : vector<16xf32>
    %9 = vector.multi_reduction <maximumf>, %3, %cst [1] : vector<16x32xf32> to vector<16xf32>
    %10 = vector.shape_cast %9 : vector<16xf32> to vector<16x1xf32>
    %11 = arith.maximumf %8, %10 : vector<16x1xf32>
    %12 = arith.subf %8, %11 : vector<16x1xf32>
    %13 = math.exp %12 : vector<16x1xf32>
    %14 = vector.broadcast %11 : vector<16x1xf32> to vector<16x32xf32>
    %15 = arith.subf %3, %14 : vector<16x32xf32>
    %16 = math.exp %15 : vector<16x32xf32>
    %c0_4 = arith.constant 0 : index
    %c0_5 = arith.constant 0 : index
    %17 = vector.load %arg7[%c0_4, %c0_5] : memref<16x1xf32, #tpu.memory_space<vmem>>, vector<16x1xf32>
    %18 = arith.mulf %17, %13 : vector<16x1xf32>
    %cst_6 = arith.constant dense<0.000000e+00> : vector<16xf32>
    %19 = vector.multi_reduction <add>, %16, %cst_6 [1] : vector<16x32xf32> to vector<16xf32>
    %20 = vector.shape_cast %19 : vector<16xf32> to vector<16x1xf32>
    %21 = arith.addf %18, %20 : vector<16x1xf32>
    %c0_7 = arith.constant 0 : index
    %c0_8 = arith.constant 0 : index
    %22 = vector.load %arg7[%c0_7, %c0_8] : memref<16x1xf32, #tpu.memory_space<vmem>>, vector<16x1xf32>
    tpu.vector_store %arg7[%c0_7, %c0_8], %21 {strides = array<i32>} : memref<16x1xf32, #tpu.memory_space<vmem>>, vector<16x1xf32>,
    %c0_9 = arith.constant 0 : index
    %c0_10 = arith.constant 0 : index
    %23 = vector.load %arg6[%c0_9, %c0_10] : memref<16x1xf32, #tpu.memory_space<vmem>>, vector<16x1xf32>
    tpu.vector_store %arg6[%c0_9, %c0_10], %11 {strides = array<i32>} : memref<16x1xf32, #tpu.memory_space<vmem>>, vector<16x1xf32>,
    %c0_11 = arith.constant 0 : index
    %c0_12 = arith.constant 0 : index
    %24 = vector.load %arg3[%c0_11, %c0_12] : memref<16x1xi32, #tpu.memory_space<vmem>>, vector<16x1xi32>
    %25 = vector.broadcast %24 : vector<16x1xi32> to vector<16x32xi32>
    %26 = arith.cmpi eq, %7, %25 : vector<16x32xi32>
    %c0_13 = arith.constant 0 : index
    %c0_14 = arith.constant 0 : index
    %27 = vector.load %arg8[%c0_13, %c0_14] : memref<16x1xf32, #tpu.memory_space<vmem>>, vector<16x1xf32>
    %cst_15 = arith.constant 0.000000e+00 : f32
    %28 = vector.broadcast %cst_15 : f32 to vector<16x32xf32>
    %29 = arith.select %26, %3, %28 : vector<16x32xi1>, vector<16x32xf32>
    %cst_16 = arith.constant dense<0.000000e+00> : vector<16xf32>
    %30 = vector.multi_reduction <add>, %29, %cst_16 [1] : vector<16x32xf32> to vector<16xf32>
    %31 = vector.shape_cast %30 : vector<16xf32> to vector<16x1xf32>
    %32 = arith.addf %27, %31 : vector<16x1xf32>
    %c0_17 = arith.constant 0 : index
    %c0_18 = arith.constant 0 : index
    %33 = vector.load %arg8[%c0_17, %c0_18] : memref<16x1xf32, #tpu.memory_space<vmem>>, vector<16x1xf32>
    tpu.vector_store %arg8[%c0_17, %c0_18], %32 {strides = array<i32>} : memref<16x1xf32, #tpu.memory_space<vmem>>, vector<16x1xf32>,
    %c0_19 = arith.constant 0 : index
    %c0_20 = arith.constant 0 : index
    %34 = vector.load %arg4[%c0_19, %c0_20] : memref<16x32xf32, #tpu.memory_space<vmem>>, vector<16x32xf32>
    %35 = arith.subf %3, %34 : vector<16x32xf32>
    %c0_21 = arith.constant 0 : index
    %c0_22 = arith.constant 0 : index
    %36 = vector.load %arg9[%c0_21, %c0_22] : memref<16x1xf32, #tpu.memory_space<vmem>>, vector<16x1xf32>
    %37 = arith.mulf %36, %13 : vector<16x1xf32>
    %38 = arith.mulf %16, %35 : vector<16x32xf32>
    %cst_23 = arith.constant dense<0.000000e+00> : vector<16xf32>
    %39 = vector.multi_reduction <add>, %38, %cst_23 [1] : vector<16x32xf32> to vector<16xf32>
    %40 = vector.shape_cast %39 : vector<16xf32> to vector<16x1xf32>
    %41 = arith.addf %37, %40 : vector<16x1xf32>
    %c0_24 = arith.constant 0 : index
    %c0_25 = arith.constant 0 : index
    %42 = vector.load %arg9[%c0_24, %c0_25] : memref<16x1xf32, #tpu.memory_space<vmem>>, vector<16x1xf32>
    tpu.vector_store %arg9[%c0_24, %c0_25], %41 {strides = array<i32>} : memref<16x1xf32, #tpu.memory_space<vmem>>, vector<16x1xf32>,
    %c0_26 = arith.constant 0 : index
    %c0_27 = arith.constant 0 : index
    %43 = vector.load %arg10[%c0_26, %c0_27] : memref<16x1xf32, #tpu.memory_space<vmem>>, vector<16x1xf32>
    %cst_28 = arith.constant dense<0xFF800000> : vector<16xf32>
    %44 = vector.multi_reduction <maximumf>, %34, %cst_28 [1] : vector<16x32xf32> to vector<16xf32>
    %45 = vector.shape_cast %44 : vector<16xf32> to vector<16x1xf32>
    %46 = arith.maximumf %43, %45 : vector<16x1xf32>
    %c0_29 = arith.constant 0 : index
    %c0_30 = arith.constant 0 : index
    %47 = vector.load %arg11[%c0_29, %c0_30] : memref<16x1xf32, #tpu.memory_space<vmem>>, vector<16x1xf32>
    %48 = arith.subf %43, %46 : vector<16x1xf32>
    %49 = math.exp %48 : vector<16x1xf32>
    %50 = arith.mulf %47, %49 : vector<16x1xf32>
    %51 = vector.broadcast %46 : vector<16x1xf32> to vector<16x32xf32>
    %52 = arith.subf %34, %51 : vector<16x32xf32>
    %53 = math.exp %52 : vector<16x32xf32>
    %cst_31 = arith.constant dense<0.000000e+00> : vector<16xf32>
    %54 = vector.multi_reduction <add>, %53, %cst_31 [1] : vector<16x32xf32> to vector<16xf32>
    %55 = vector.shape_cast %54 : vector<16xf32> to vector<16x1xf32>
    %56 = arith.addf %50, %55 : vector<16x1xf32>
    %c0_32 = arith.constant 0 : index
    %c0_33 = arith.constant 0 : index
    %57 = vector.load %arg11[%c0_32, %c0_33] : memref<16x1xf32, #tpu.memory_space<vmem>>, vector<16x1xf32>
    tpu.vector_store %arg11[%c0_32, %c0_33], %56 {strides = array<i32>} : memref<16x1xf32, #tpu.memory_space<vmem>>, vector<16x1xf32>,
    %c0_34 = arith.constant 0 : index
    %c0_35 = arith.constant 0 : index
    %58 = vector.load %arg10[%c0_34, %c0_35] : memref<16x1xf32, #tpu.memory_space<vmem>>, vector<16x1xf32>
    tpu.vector_store %arg10[%c0_34, %c0_35], %46 {strides = array<i32>} : memref<16x1xf32, #tpu.memory_space<vmem>>, vector<16x1xf32>,
    %c0_i32_36 = arith.constant 0 : i32
    %59 = arith.cmpi eq, %arg1, %c0_i32_36 : i32
    %60 = arith.extui %59 : i1 to i32
    %c0_i32_37 = arith.constant 0 : i32
    %61 = arith.cmpi ne, %60, %c0_i32_37 : i32
    scf.if %61 {
      %c16_i32 = arith.constant 16 : i32
      %62 = arith.muli %arg0, %c16_i32 : i32
      %63 = tpu.iota {dimensions = array<i32: 0>} : vector<16x1xi32>
      %64 = vector.broadcast %62 : i32 to vector<16x1xi32>
      %65 = arith.addi %64, %63 : vector<16x1xi32>
      %c16_i32_38 = arith.constant 16 : i32
      %66 = vector.broadcast %c16_i32_38 : i32 to vector<16x1xi32>
      %67 = arith.cmpi slt, %65, %66 : vector<16x1xi32>
      %c0_39 = arith.constant 0 : index
      %c0_40 = arith.constant 0 : index
      %68 = vector.load %arg6[%c0_39, %c0_40] : memref<16x1xf32, #tpu.memory_space<vmem>>, vector<16x1xf32>
      %c0_41 = arith.constant 0 : index
      %c0_42 = arith.constant 0 : index
      %69 = vector.load %arg7[%c0_41, %c0_42] : memref<16x1xf32, #tpu.memory_space<vmem>>, vector<16x1xf32>
      %70 = math.log %69 : vector<16x1xf32>
      %71 = arith.addf %68, %70 : vector<16x1xf32>
      %c0_43 = arith.constant 0 : index
      %c0_44 = arith.constant 0 : index
      %72 = vector.load %arg8[%c0_43, %c0_44] : memref<16x1xf32, #tpu.memory_space<vmem>>, vector<16x1xf32>
      %73 = arith.subf %71, %72 : vector<16x1xf32>
      %cst_45 = arith.constant 0.000000e+00 : f32
      %74 = vector.broadcast %cst_45 : f32 to vector<16x1xf32>
      %75 = arith.select %67, %73, %74 : vector<16x1xi1>, vector<16x1xf32>
      %76 = vector.shape_cast %75 : vector<16x1xf32> to vector<1x16x1xf32>
      %cst_46 = arith.constant dense<0.000000e+00> : vector<1xf32>
      %77 = vector.multi_reduction <add>, %76, %cst_46 [1, 2] : vector<1x16x1xf32> to vector<1xf32>
      %78 = vector.shape_cast %77 : vector<1xf32> to vector<1x1x1xf32>
      %79 = vector.extract %78[0, 0, 0] : f32 from vector<1x1x1xf32>
      %c0_47 = arith.constant 0 : index
      %c0_48 = arith.constant 0 : index
      %80 = vector.load %arg10[%c0_47, %c0_48] : memref<16x1xf32, #tpu.memory_space<vmem>>, vector<16x1xf32>
      %c0_49 = arith.constant 0 : index
      %c0_50 = arith.constant 0 : index
      %81 = vector.load %arg11[%c0_49, %c0_50] : memref<16x1xf32, #tpu.memory_space<vmem>>, vector<16x1xf32>
      %82 = math.log %81 : vector<16x1xf32>
      %83 = arith.addf %80, %82 : vector<16x1xf32>
      %c0_51 = arith.constant 0 : index
      %c0_52 = arith.constant 0 : index
      %84 = vector.load %arg9[%c0_51, %c0_52] : memref<16x1xf32, #tpu.memory_space<vmem>>, vector<16x1xf32>
      %c0_53 = arith.constant 0 : index
      %c0_54 = arith.constant 0 : index
      %85 = vector.load %arg7[%c0_53, %c0_54] : memref<16x1xf32, #tpu.memory_space<vmem>>, vector<16x1xf32>
      %86 = arith.divf %84, %85 : vector<16x1xf32>
      %87 = arith.subf %86, %71 : vector<16x1xf32>
      %88 = arith.addf %87, %83 : vector<16x1xf32>
      %cst_55 = arith.constant 0.000000e+00 : f32
      %89 = vector.broadcast %cst_55 : f32 to vector<16x1xf32>
      %90 = arith.select %67, %88, %89 : vector<16x1xi1>, vector<16x1xf32>
      %91 = vector.shape_cast %90 : vector<16x1xf32> to vector<1x16x1xf32>
      %cst_56 = arith.constant dense<0.000000e+00> : vector<1xf32>
      %92 = vector.multi_reduction <add>, %91, %cst_56 [1, 2] : vector<1x16x1xf32> to vector<1xf32>
      %93 = vector.shape_cast %92 : vector<1xf32> to vector<1x1x1xf32>
      %94 = vector.extract %93[0, 0, 0] : f32 from vector<1x1x1xf32>
      %95 = tpu.iota {dimensions = array<i32: 2>} : vector<1x8x128xi32>
      %96 = tpu.iota {dimensions = array<i32: 1>} : vector<1x8x128xi32>
      %c0_i32_57 = arith.constant 0 : i32
      %97 = vector.broadcast %c0_i32_57 : i32 to vector<1x8x128xi32>
      %98 = arith.cmpi eq, %96, %97 : vector<1x8x128xi32>
      %c0_i32_58 = arith.constant 0 : i32
      %99 = vector.broadcast %c0_i32_58 : i32 to vector<1x8x128xi32>
      %100 = arith.cmpi eq, %95, %99 : vector<1x8x128xi32>
      %101 = arith.andi %98, %100 : vector<1x8x128xi1>
      %cst_59 = arith.constant 0.000000e+00 : f32
      %102 = vector.broadcast %79 : f32 to vector<1x8x128xf32>
      %103 = vector.broadcast %cst_59 : f32 to vector<1x8x128xf32>
      %104 = arith.select %101, %102, %103 : vector<1x8x128xi1>, vector<1x8x128xf32>
      %c0_i32_60 = arith.constant 0 : i32
      %105 = vector.broadcast %c0_i32_60 : i32 to vector<1x8x128xi32>
      %106 = arith.cmpi eq, %96, %105 : vector<1x8x128xi32>
      %c1_i32 = arith.constant 1 : i32
      %107 = vector.broadcast %c1_i32 : i32 to vector<1x8x128xi32>
      %108 = arith.cmpi eq, %95, %107 : vector<1x8x128xi32>
      %109 = arith.andi %106, %108 : vector<1x8x128xi1>
      %110 = vector.broadcast %94 : f32 to vector<1x8x128xf32>
      %111 = arith.select %109, %110, %104 : vector<1x8x128xi1>, vector<1x8x128xf32>
      %c0_61 = arith.constant 0 : index
      %c0_62 = arith.constant 0 : index
      %c0_63 = arith.constant 0 : index
      %112 = vector.load %arg5[%c0_61, %c0_62, %c0_63] : memref<1x8x128xf32, #tpu.memory_space<vmem>>, vector<1x8x128xf32>
      tpu.vector_store %arg5[%c0_61, %c0_62, %c0_63], %111 {strides = array<i32>} : memref<1x8x128xf32, #tpu.memory_space<vmem>>, vector<1x8x128xf32>,
    } else {
    }
    return
  }
  func.func @transform_0(%arg0: i32, %arg1: i32) -> (i32, i32) {
    %c0_i32 = arith.constant 0 : i32
    return %arg0, %arg1 : i32, i32
  }
  func.func @transform_1(%arg0: i32, %arg1: i32) -> (i32, i32) {
    %c0_i32 = arith.constant 0 : i32
    %c0_i32_0 = arith.constant 0 : i32
    return %arg0, %c0_i32 : i32, i32
  }
  func.func @transform_2(%arg0: i32, %arg1: i32) -> (i32, i32) {
    %c0_i32 = arith.constant 0 : i32
    return %arg0, %arg1 : i32, i32
  }
  func.func @transform_3(%arg0: i32, %arg1: i32) -> (i32, i32, i32) {
    %c0_i32 = arith.constant 0 : i32
    %c0_i32_0 = arith.constant 0 : i32
    %c0_i32_1 = arith.constant 0 : i32
    return %arg0, %c0_i32, %c0_i32_0 : i32, i32, i32
  }
}

</mosaic_0001>

<bundles_post_ra>
// kernel: _lambda_.1
= control target key start
LH: loop header
LB: loop body
LE: loop exit
PB: predicated region body
PF: predicated region fallthrough
CT: control target
= control target key end

     0   :  { %8 = vsyncpa [#allocation9], 0  ;;  %s347_s12 = smov [#allocation8]   ;;  %s512_s0 = inlined_call_operand.vmem [shape: f32[16,32], index: 0, kind: input, shape index: {}]   ;;  %s513_s1 = inlined_call_operand.vmem [shape: s32[16,1], index: 1, kind: input, shape index: {}]   ;;  %s514_s2 = inlined_call_operand.hbm [shape: f32[16,32], index: 2, kind: input, shape index: {}]   ;;  %s515_s3 = inlined_call_operand.vmem [shape: f32[1,8,128], index: 3, kind: output, shape index: {}]  }
   0x1   :  { %s18_s13 = sshll.u32 %s347_s12, 4  ;;  %s323_s16 = scalar_lea.hbm %s514_s2, 256  ;;  %s19_s13 = int_to_ptr.vmem [resolvable:$true] %s18_s13 }
   0x2   :  { %p324_p0 = scmp.ne.s32.totalorder %s514_s2, %s323_s16  ;;  %p327_p1 = scmp.lt.u32.totalorder %s323_s16, %s514_s2 }
   0x4   :  { %p329_p2 = pnand %p327_p1, %p324_p0 }
   0x6   :  { %332 = shalt.err (!%p329_p2)
}
   0x7   :  { %s333_s21 = scalar_lea.vmem %s19_s13, 256  ;;  %p338_p4 = scmp.lt.s32.totalorder %s19_s13, %s19_s13 }
   0x8   :  { %p334_p3 = scmp.ne.s32.totalorder %s19_s13, %s333_s21  ;;  %p339_p5 = scmp.lt.s32.totalorder %s333_s21, %s333_s21 }
   0xa   :  { %p340_p6 = por %p339_p5, %p338_p4 }
   0xc   :  { %p341_p7 = pnand %p340_p6, %p334_p3 }
   0xe   :  { %344 = shalt.err (!%p341_p7)
}
   0xf   :  { %s348_s22 = smov 128   ;;  %s349_s23 = smov 8  }
  0x10   :  { %24 = dma.hbm_to_vmem [thread:$0]  %s514_s2, 256, %s19_s13, [#allocation9], %s348_s22, %s348_s22, %s349_s23  }
  0x11   :  { %345 = dma.done.wait [#allocation9], 256  }
  0x12   :  { %346 = vsyncadd [#allocation9], 4294967040  ;;  %vm32_vm0 = vcmask 7168   ;;  %v350_v0 = vmov -inf   ;;  %vm54_vm1 = vcmask 261120   ;;  %v392_v1 = vld [vmem:[%s512_s0] sm:$0xff]  ;;  %v48_v40 = vlaneseq }
  0x13   :  { %33 = vst.msk [vmem:[#allocation2] sm:$0xff] %vm32_vm0, %v350_v0  ;;  %34 = vst.msk [vmem:[#allocation2 + $0x8] sm:$0xff] %vm32_vm0, %v350_v0  ;;  %v397_v2 = vld [vmem:[%s512_s0 + $0x8] sm:$0xff]  ;;  %v399_v3 = vld [vmem:[#allocation8] sm:$0xff]  ;;  %v55_v4 = vsel %vm54_vm1, %v392_v1, -inf  ;;  %v351_v9 = vmov 0  }
  0x14   :  { %41 = vst.msk [vmem:[#allocation6] sm:$0xff] %vm32_vm0, %v350_v0  ;;  %42 = vst.msk [vmem:[#allocation6 + $0x8] sm:$0xff] %vm32_vm0, %v350_v0  ;;  %v148_v5 = vsel %vm54_vm1, %v399_v3, -inf  ;;  %v405_v6 = vld [vmem:[#allocation8 + $0x8] sm:$0xff]  ;;  %56 = vmax.xlane.f32.xlu0 %v55_v4  ;;  %v58_v7 = vsel %vm54_vm1, %v397_v2, -inf  ;;  %294 = vset.pattern.permute.xlu1 %v351_v9  ;;  %v352_v10 = vmov 0.0   ;;  %v128_v43 = vsub.f32 %v392_v1, %v399_v3 }
  0x15   :  { %149 = vmax.xlane.f32.xlu1 %v148_v5  ;;  %v151_v8 = vsel %vm54_vm1, %v405_v6, -inf  ;;  %293 = vset.pattern.permute.xlu0 %v351_v9  ;;  %35 = vst.msk [vmem:[#allocation3] sm:$0xff] %vm32_vm0, %v352_v10  ;;  %36 = vst.msk [vmem:[#allocation3 + $0x8] sm:$0xff] %vm32_vm0, %v352_v10  ;;  %v102_v27 = vld [vmem:[%s513_s1] sm:$0xff]  ;;  %v103_v28 = vld [vmem:[%s513_s1 + $0x8] sm:$0xff]  ;;  %v473_v45 = vand.u32 127, %v48_v40  ;;  %v129_v53 = vsub.f32 %v397_v2, %v405_v6 }
  0x16   :  { %37 = vst.msk [vmem:[#allocation4] sm:$0xff] %vm32_vm0, %v352_v10  ;;  %38 = vst.msk [vmem:[#allocation4 + $0x8] sm:$0xff] %vm32_vm0, %v352_v10 }
  0x17   :  { %39 = vst.msk [vmem:[#allocation5] sm:$0xff] %vm32_vm0, %v352_v10  ;;  %40 = vst.msk [vmem:[#allocation5 + $0x8] sm:$0xff] %vm32_vm0, %v352_v10  ;;  %vm269_vm5 = vcmp.eq.s32.totalorder %v473_v45, 0  ;;  %vm273_vm6 = vcmp.eq.s32.totalorder %v473_v45, 1 }
  0x18   :  { %59 = vmax.xlane.f32.xlu0 %v58_v7  ;;  %43 = vst.msk [vmem:[#allocation7] sm:$0xff] %vm32_vm0, %v352_v10  ;;  %44 = vst.msk [vmem:[#allocation7 + $0x8] sm:$0xff] %vm32_vm0, %v352_v10 }
  0x19   :  { %152 = vmax.xlane.f32.xlu1 %v151_v8 }
  0x1a   :  { %v419_v11 = vld [vmem:[#allocation2] sm:$0xff]  ;;  %v429_v17 = vld [vmem:[#allocation2 + $0x8] sm:$0xff] }
  0x1b   :  { %v421_v12 = vld [vmem:[#allocation6] sm:$0xff]  ;;  %v431_v18 = vld [vmem:[#allocation6 + $0x8] sm:$0xff] }
  0x1c   :  { %v85_v5 = vld [vmem:[#allocation3] sm:$0xff]  ;;  %v86_v8 = vld [vmem:[#allocation3 + $0x8] sm:$0xff] }
  0xa1   :  { %v57_v13 = vpop.xlane.xlu0 %56 }
  0xa2   :  { %v150_v14 = vpop.xlane.xlu1 %149  ;;  %v424_v15 = vmax.f32 %v419_v11, %v57_v13 }
  0xa3   :  { %v427_v16 = vmax.f32 %v421_v12, %v150_v14  ;;  %v156_v14 = vld [vmem:[#allocation7] sm:$0xff] }
  0xa4   :  { %v63_v19 = vsub.f32 %v419_v11, %v424_v15  ;;  %100 = vst.msk [vmem:[#allocation2] sm:$0xff] %vm32_vm0, %v424_v15  ;;  %71 = vperm.xlu0 %293, %v424_v15   ;;  %v130_v15 = vld [vmem:[#allocation5] sm:$0xff] }
  0xa5   :  { %v158_v20 = vsub.f32 %v421_v12, %v427_v16  ;;  %192 = vst.msk [vmem:[#allocation6] sm:$0xff] %vm32_vm0, %v427_v16  ;;  %v60_v21 = vpop.xlane.xlu0 %59 }
  0xa6   :  { %v153_v22 = vpop.xlane.xlu1 %152  ;;  %v443_v23 = vmax.f32 %v429_v17, %v60_v21  ;;  %v65_v63 = vmul.f32 1.442695, %v63_v19  ;;  %v157_v21 = vld [vmem:[#allocation7 + $0x8] sm:$0xff] }
  0xa7   :  { %v446_v24 = vmax.f32 %v431_v18, %v153_v22 }
  0xa8   :  { %v64_v25 = vsub.f32 %v429_v17, %v443_v23  ;;  %101 = vst.msk [vmem:[#allocation2 + $0x8] sm:$0xff] %vm32_vm0, %v443_v23  ;;  %76 = vperm.xlu1 %294, %v443_v23  }
  0xa9   :  { %v159_v26 = vsub.f32 %v431_v18, %v446_v24  ;;  %193 = vst.msk [vmem:[#allocation6 + $0x8] sm:$0xff] %vm32_vm0, %v446_v24 }
  0xaa   :  { %v67_v0 = vmul.f32 1.442695, %v64_v25 }
  0xac   :  { %168 = vperm.xlu1 %294, %v427_v16  }
  0xb0   :  { %173 = vperm.xlu1 %294, %v446_v24   ;;  %v112_v24 = vld [vmem:[#allocation4] sm:$0xff] }
  0xb4   :  { %105 = vperm.xlu1 %294, %v102_v27  }
  0xb8   :  { %108 = vperm.xlu1 %294, %v103_v28  }
 0x123   :  { %v72_v29 = vpop.permute.xlu0 %71 }
 0x124   :  { %v79_v30 = vsub.f32 %v392_v1, %v72_v29  ;;  %v131_v29 = vld [vmem:[#allocation5 + $0x8] sm:$0xff] }
 0x126   :  { %v81_v31 = vmul.f32 1.442695, %v79_v30 }
 0x127   :  { %v77_v32 = vpop.permute.xlu1 %76 }
 0x128   :  { %295 = vpow2.f32 %v81_v31  ;;  %v80_v33 = vsub.f32 %v397_v2, %v77_v32 }
 0x12a   :  { %v83_v34 = vmul.f32 1.442695, %v80_v33 }
 0x12b   :  { %v169_v35 = vpop.permute.xlu1 %168 }
 0x12c   :  { %297 = vpow2.f32 %v83_v34  ;;  %v176_v36 = vsub.f32 %v399_v3, %v169_v35  ;;  %v162_v3 = vmul.f32 1.442695, %v159_v26 }
 0x12e   :  { %v178_v37 = vmul.f32 1.442695, %v176_v36  ;;  %v113_v36 = vld [vmem:[#allocation4 + $0x8] sm:$0xff] }
 0x12f   :  { %v174_v38 = vpop.permute.xlu1 %173 }
 0x130   :  { %299 = vpow2.f32 %v178_v37  ;;  %v177_v39 = vsub.f32 %v405_v6, %v174_v38 }
 0x132   :  { %v296_v41 = vpop.eup %295  ;;  %v180_v42 = vmul.f32 1.442695, %v177_v39 }
 0x133   :  { %v89_v44 = vsel %vm54_vm1, %v296_v41, 0.0  ;;  %v106_v47 = vpop.permute.xlu1 %105  ;;  %v134_v49 = vmul.f32 %v296_v41, %v128_v43 }
 0x134   :  { %301 = vpow2.f32 %v180_v42  ;;  %90 = vadd.xlane.f32.xlu1 %v89_v44  ;;  %vm110_vm2 = vcmp.eq.s32.totalorder %v473_v45, %v106_v47  ;;  %v206_v44 = vld [vmem:[#allocation2] sm:$0xff] }
 0x135   :  { %v136_v51 = vsel %vm54_vm1, %v134_v49, 0.0  ;;  %v114_v54 = vsel %vm110_vm2, %v392_v1, 0.0  ;;  %303 = vpow2.f32 %v65_v63  ;;  %v160_v1 = vmul.f32 1.442695, %v158_v20 }
 0x136   :  { %v298_v46 = vpop.eup %297  ;;  %v116_v57 = vsel %vm54_vm1, %v114_v54, 0.0  ;;  %305 = vpow2.f32 %v67_v0 }
 0x137   :  { %v92_v48 = vsel %vm54_vm1, %v298_v46, 0.0  ;;  %v109_v56 = vpop.permute.xlu1 %108  ;;  %v135_v59 = vmul.f32 %v298_v46, %v129_v53  ;;  %307 = vpow2.f32 %v160_v1 }
 0x138   :  { %93 = vadd.xlane.f32.xlu0 %v92_v48  ;;  %vm111_vm3 = vcmp.eq.s32.totalorder %v473_v45, %v109_v56  ;;  %309 = vpow2.f32 %v162_v3 }
 0x139   :  { %v139_v60 = vsel %vm54_vm1, %v135_v59, 0.0  ;;  %v115_v61 = vsel %vm111_vm3, %v397_v2, 0.0 }
 0x13a   :  { %v300_v50 = vpop.eup %299  ;;  %v119_v62 = vsel %vm54_vm1, %v115_v61, 0.0 }
 0x13b   :  { %v182_v52 = vsel %vm54_vm1, %v300_v50, 0.0  ;;  %v207_v50 = vld [vmem:[#allocation2 + $0x8] sm:$0xff] }
 0x13c   :  { %137 = vadd.xlane.f32.xlu0 %v136_v51  ;;  %183 = vadd.xlane.f32.xlu1 %v182_v52 }
 0x13e   :  { %v302_v55 = vpop.eup %301 }
 0x13f   :  { %v185_v58 = vsel %vm54_vm1, %v302_v55, 0.0  ;;  %v304_v4 = vpop.eup %303 }
 0x140   :  { %117 = vadd.xlane.f32.xlu0 %v116_v57  ;;  %186 = vadd.xlane.f32.xlu1 %v185_v58  ;;  %v87_v2 = vmul.f32 %v304_v4, %v85_v5  ;;  %v306_v6 = vpop.eup %305  ;;  %v132_v16 = vmul.f32 %v304_v4, %v130_v15 }
 0x141   :  { %v88_v10 = vmul.f32 %v306_v6, %v86_v8  ;;  %v308_v11 = vpop.eup %307  ;;  %v133_v33 = vmul.f32 %v306_v6, %v131_v29  ;;  %v199_v29 = vshrl.u32 %v48_v40, 7 }
 0x142   :  { %v164_v12 = vmul.f32 %v308_v11, %v156_v14  ;;  %v310_v18 = vpop.eup %309 }
 0x143   :  { %v165_v26 = vmul.f32 %v310_v18, %v157_v21  ;;  %vm268_vm4 = vcmp.eq.s32.totalorder %v199_v29, 0 }
 0x144   :  { %140 = vadd.xlane.f32.xlu1 %v139_v60  ;;  %v234_v60 = vld [vmem:[#allocation6] sm:$0xff]  ;;  %vm270_vm7 = vmand %vm268_vm4, %vm269_vm5 }
 0x145   :  { %vm274_vm8 = vmand %vm268_vm4, %vm273_vm6 }
 0x148   :  { %120 = vadd.xlane.f32.xlu1 %v119_v62 }
 0x1c1   :  { %v91_v7 = vpop.xlane.xlu1 %90 }
 0x1c2   :  { %v95_v9 = vadd.f32 %v91_v7, %v87_v2  ;;  %v235_v7 = vld [vmem:[#allocation6 + $0x8] sm:$0xff] }
 0x1c4   :  { %98 = vst.msk [vmem:[#allocation3] sm:$0xff] %vm32_vm0, %v95_v9 }
 0x1c5   :  { %v94_v13 = vpop.xlane.xlu0 %93 }
 0x1c6   :  { %v96_v17 = vadd.f32 %v94_v13, %v88_v10 }
 0x1c8   :  { %99 = vst.msk [vmem:[#allocation3 + $0x8] sm:$0xff] %vm32_vm0, %v96_v17 }
 0x1c9   :  { %v184_v19 = vpop.xlane.xlu1 %183  ;;  %v138_v20 = vpop.xlane.xlu0 %137 }
 0x1ca   :  { %v188_v22 = vadd.f32 %v184_v19, %v164_v12  ;;  %v142_v23 = vadd.f32 %v138_v20, %v132_v16 }
 0x1cb   :  { %v208_v25 = vld [vmem:[#allocation3] sm:$0xff] }
 0x1cc   :  { %190 = vst.msk [vmem:[#allocation7] sm:$0xff] %vm32_vm0, %v188_v22  ;;  %144 = vst.msk [vmem:[#allocation5] sm:$0xff] %vm32_vm0, %v142_v23  ;;  %311 = vlog2.f32 %v208_v25 }
 0x1cd   :  { %v187_v27 = vpop.xlane.xlu1 %186  ;;  %v118_v28 = vpop.xlane.xlu0 %117 }
 0x1ce   :  { %v189_v30 = vadd.f32 %v187_v27, %v165_v26  ;;  %v122_v31 = vadd.f32 %v118_v28, %v112_v24 }
 0x1cf   :  { %v209_v32 = vld [vmem:[#allocation3 + $0x8] sm:$0xff] }
 0x1d0   :  { %191 = vst.msk [vmem:[#allocation7 + $0x8] sm:$0xff] %vm32_vm0, %v189_v30  ;;  %124 = vst.msk [vmem:[#allocation4] sm:$0xff] %vm32_vm0, %v122_v31  ;;  %313 = vlog2.f32 %v209_v32 }
 0x1d1   :  { %v141_v34 = vpop.xlane.xlu1 %140  ;;  %315 = vrcp.f32 %v208_v25 }
 0x1d2   :  { %v143_v35 = vadd.f32 %v141_v34, %v133_v33  ;;  %317 = vrcp.f32 %v209_v32 }
 0x1d3   :  { %v236_v37 = vld [vmem:[#allocation7] sm:$0xff] }
 0x1d4   :  { %145 = vst.msk [vmem:[#allocation5 + $0x8] sm:$0xff] %vm32_vm0, %v143_v35  ;;  %319 = vlog2.f32 %v236_v37  ;;  %v244_v61 = vld [vmem:[#allocation5] sm:$0xff] }
 0x1d5   :  { %v121_v38 = vpop.xlane.xlu1 %120 }
 0x1d6   :  { %v312_v39 = vpop.eup %311  ;;  %v123_v41 = vadd.f32 %v121_v38, %v113_v36 }
 0x1d7   :  { %v211_v42 = vmul.f32 0.6931472, %v312_v39  ;;  %v237_v43 = vld [vmem:[#allocation7 + $0x8] sm:$0xff]  ;;  %v216_v53 = vld [vmem:[#allocation4] sm:$0xff] }
 0x1d8   :  { %125 = vst.msk [vmem:[#allocation4 + $0x8] sm:$0xff] %vm32_vm0, %v123_v41  ;;  %321 = vlog2.f32 %v237_v43 }
 0x1d9   :  { %v214_v47 = vadd.f32 %v211_v42, %v206_v44 }
 0x1da   :  { %v314_v46 = vpop.eup %313 }
 0x1db   :  { %v213_v48 = vmul.f32 0.6931472, %v314_v46  ;;  %v316_v49 = vpop.eup %315  ;;  %v218_v55 = vsub.f32 %v214_v47, %v216_v53  ;;  %v245_v56 = vld [vmem:[#allocation5 + $0x8] sm:$0xff] }
 0x1dc   :  { %v318_v51 = vpop.eup %317  ;;  %v247_v63 = vmul.f32 %v316_v49, %v244_v61 }
 0x1dd   :  { %v215_v52 = vadd.f32 %v213_v48, %v207_v50  ;;  %v249_v0 = vmul.f32 %v318_v51, %v245_v56  ;;  %v222_v3 = vsel %vm32_vm0, %v218_v55, 0.0 }
 0x1de   :  { %v320_v54 = vpop.eup %319  ;;  %v250_v6 = vsub.f32 %v247_v63, %v214_v47 }
 0x1df   :  { %v217_v57 = vld [vmem:[#allocation4 + $0x8] sm:$0xff]  ;;  %v239_v58 = vmul.f32 0.6931472, %v320_v54  ;;  %v251_v9 = vsub.f32 %v249_v0, %v215_v52 }
 0x1e0   :  { %v219_v59 = vsub.f32 %v215_v52, %v217_v57 }
 0x1e1   :  { %v242_v62 = vadd.f32 %v239_v58, %v234_v60 }
 0x1e2   :  { %v322_v1 = vpop.eup %321  ;;  %v223_v4 = vsel %vm32_vm0, %v219_v59, 0.0 }
 0x1e3   :  { %v224_v5 = vadd.f32 %v223_v4, %v222_v3  ;;  %v241_v2 = vmul.f32 0.6931472, %v322_v1  ;;  %v252_v10 = vadd.f32 %v250_v6, %v242_v62 }
 0x1e5   :  { %225 = vadd.xlane.f32.xlu0 %v224_v5  ;;  %v243_v8 = vadd.f32 %v241_v2, %v235_v7  ;;  %v256_v13 = vsel %vm32_vm0, %v252_v10, 0.0 }
 0x1e7   :  { %v253_v11 = vadd.f32 %v251_v9, %v243_v8 }
 0x1e9   :  { %v257_v14 = vsel %vm32_vm0, %v253_v11, 0.0 }
 0x1ea   :  { %v258_v15 = vadd.f32 %v257_v14, %v256_v13 }
 0x1ec   :  { %259 = vadd.xlane.f32.xlu1 %v258_v15 }
 0x272   :  { %v226_v17 = vpop.xlane.xlu0 %225 }
 0x273   :  { %v227_v12 = vrot.slane %v226_v17, 4 }
 0x275   :  { %v228_v16 = vadd.f32 %v227_v12, %v226_v17 }
 0x277   :  { %v229_v18 = vrot.slane %v228_v16, 2 }
 0x279   :  { %v260_v19 = vpop.xlane.xlu1 %259  ;;  %v230_v20 = vadd.f32 %v229_v18, %v228_v16 }
 0x27a   :  { %v261_v21 = vrot.slane %v260_v19, 4 }
 0x27b   :  { %v231_v22 = vrot.slane %v230_v20, 1 }
 0x27c   :  { %v262_v23 = vadd.f32 %v261_v21, %v260_v19 }
 0x27d   :  { %v232_v24 = vadd.f32 %v231_v22, %v230_v20 }
 0x27e   :  { %v263_v25 = vrot.slane %v262_v23, 2 }
 0x27f   :  { %283 = vpush %v232_v24 }
 0x280   :  { %v264_v26 = vadd.f32 %v263_v25, %v262_v23 }
 0x282   :  { %v265_v27 = vrot.slane %v264_v26, 1 }
 0x284   :  { %v266_v28 = vadd.f32 %v265_v27, %v264_v26 }
 0x286   :  { %285 = vpush %v266_v28 }
 0x2b0   :  { %s284_s1 = spop %283 }
 0x2b1   :  { %v271_v30 = vstv %s284_s1 }
 0x2b2   :  { %v272_v31 = vsel %vm270_vm7, %v271_v30, 0.0 }
 0x2b7   :  { %s286_s5 = spop %285 }
 0x2b8   :  { %v275_v32 = vstv %s286_s5 }
 0x2b9   :  { %v276_v33 = vsel %vm274_vm8, %v275_v32, %v272_v31 }
 0x2ba   :  { %277 = vst [vmem:[%s515_s3] sm:$0xff] %v276_v33 }
 0x2bb   :  { %282 = vsyncpa [#allocation9], 1 }

</bundles_post_ra>
